<compile_context>
chip_gen: v7x
topology: tpu7x:2x2x1
jax: 0.10.0
libtpu: 0.0.40
codegen_flags: <defaults>
</compile_context>

<pallas_src>
import jax
import jax.numpy as jnp
from jax import lax
from jax.experimental import pallas as pl
from jax.experimental.pallas import tpu as pltpu

BN_EPS = 1e-5


def _multiscale_flows_kernel(x_ref, w1_ref, b1_ref, g_ref, be_ref, w2_ref, b2_ref,
                             *o_refs):
    """Runs all num_flow_layers affine-coupling flows on the (B, F) block in VMEM."""
    x = x_ref[...].astype(jnp.float32)
    num_flows = w1_ref.shape[0]
    batch, feat = x.shape
    inv_b = 1.0 / batch  # static

    for f in range(num_flows):  # static, unrolled loop over flows
        # --- Linear(in -> hidden). The kept-half input masking is folded into W1
        # (masked-out input rows are zero), so x is fed directly to the MXU. ---
        h = jnp.dot(x, w1_ref[f], preferred_element_type=jnp.float32) + b1_ref[f:f + 1, :]

        # --- One-pass BatchNorm1d (train mode, biased batch variance) fused with the
        # affine into a single FMA, then ReLU. f32 accumulation throughout. ---
        mean = jnp.sum(h, axis=0, keepdims=True) * inv_b
        ex2 = jnp.sum(h * h, axis=0, keepdims=True) * inv_b
        var = ex2 - mean * mean
        a = g_ref[f:f + 1, :] * lax.rsqrt(var + BN_EPS)
        h = jnp.maximum(h * a + (be_ref[f:f + 1, :] - mean * a), 0.0)

        # --- Single merged Linear(hidden -> 2*in) dot (scale|trans halves). The
        # (1 - mask) factor is folded into W2's output columns and b2, so scale == 0
        # and trans == 0 on kept lanes and the coupling update collapses to
        # x * exp(scale) + trans (exp(0) == 1 on kept lanes). ---
        y = jnp.dot(h, w2_ref[f], preferred_element_type=jnp.float32) + b2_ref[f:f + 1, :]
        scale = jnp.tanh(y[:, :feat])
        trans = y[:, feat:]
        x = x * jnp.exp(scale) + trans

    if len(o_refs) == 2:
        # Fused SplitLayer outputs -- only used when F//2 is a multiple of 128
        # (lane-aligned stores).
        o_use_ref, o_dis_ref = o_refs
        split = feat // 2
        o_dis_ref[...] = x[:, :split].astype(o_dis_ref.dtype)
        o_use_ref[...] = x[:, split:].astype(o_use_ref.dtype)
    else:
        # Lane-dense single (B, F) output; the wrapper performs the split in XLA.
        o_refs[0][...] = x.astype(o_refs[0].dtype)


def multi_scale_layer_1d_forward(x_use, x_disuse, kparams):
    """MultiScaleLayer1D.forward(x_use, x_disuse, inverse=False, jacobian=False).

    `kparams` must be the mask-folded parameters produced by `fold_params`.
    """
    w1, b1 = kparams["w1"], kparams["b1"]
    gamma, beta = kparams["gamma"], kparams["beta"]
    w2, b2 = kparams["w2"], kparams["b2"]

    B, F = x_use.shape
    split = F // 2
    nf, _, H = w1.shape

    vmem = pl.BlockSpec(memory_space=pltpu.MemorySpace.VMEM)

    # Advisory cost hint for XLA's scheduler.
    flops = nf * (2 * B * F * H            # linear 1
                  + 2 * B * H * (2 * F)    # merged linear 2
                  + 8 * B * H + 6 * B * F + 8 * H)
    transcendentals = nf * (2 * B * F + H)  # tanh + exp (+ per-channel rsqrt)
    io_bytes = 4 * (2 * B * F + nf * (F * H + 3 * H + 2 * H * F + 2 * F))
    cost = pl.CostEstimate(flops=int(flops),
                           transcendentals=int(transcendentals),
                           bytes_accessed=int(io_bytes))

    # Generous VMEM bound: whole-array operands + f32 temporaries + headroom
    # (important on v7x where default scoped VMEM is tighter).
    work_bytes = io_bytes + 4 * B * (3 * H + 4 * F)
    vmem_limit = min(64 * 1024 * 1024, max(8 * work_bytes, 4 * 1024 * 1024))
    cparams = pltpu.CompilerParams(vmem_limit_bytes=int(vmem_limit))

    fused_split = (split % 128 == 0)
    if fused_split:
        out_shape = (jax.ShapeDtypeStruct((B, split), x_use.dtype),
                     jax.ShapeDtypeStruct((B, split), x_use.dtype))
        out_specs = (vmem, vmem)
    else:
        out_shape = jax.ShapeDtypeStruct((B, F), x_use.dtype)
        out_specs = vmem

    out = pl.pallas_call(
        _multiscale_flows_kernel,
        out_shape=out_shape,
        grid=(),
        in_specs=[vmem] * 7,
        out_specs=out_specs,
        compiler_params=cparams,
        cost_estimate=cost,
    )(x_use, w1, b1, gamma, beta, w2, b2)

    if fused_split:
        new_x_use, new_disuse_chunk = out
    else:
        new_disuse_chunk = out[:, :split]
        new_x_use = out[:, split:]

    if x_disuse is not None:
        new_x_disuse = jnp.concatenate([x_disuse, new_disuse_chunk], axis=1)
    else:
        new_x_disuse = new_disuse_chunk
    return new_x_use, new_x_disuse


def init_params(key, in_features, layer_id, hidden_features, num_flow_layers):
    """Deterministic raw parameters matching AffineCouplingLayer1D (num_nn_layers=2).

    Weights stored as (in, out) -- transpose of PyTorch's (out, in). Masks are the
    checkerboard masks (pattern = flow_idx % 2), shaped (num_flows, 1, F)."""
    feat = in_features // (2 ** layer_id)
    lim1 = float(feat) ** -0.5
    lim2 = float(hidden_features) ** -0.5
    w1s, b1s, gs, bs, w2s, b2s, masks = [], [], [], [], [], [], []
    for i in range(num_flow_layers):
        key, k1, k2, k3, k4 = jax.random.split(key, 5)
        w1s.append(jax.random.uniform(k1, (feat, hidden_features), jnp.float32, -lim1, lim1))
        b1s.append(jax.random.uniform(k2, (hidden_features,), jnp.float32, -lim1, lim1))
        gs.append(jnp.ones((hidden_features,), jnp.float32))    # BatchNorm1d weight
        bs.append(jnp.zeros((hidden_features,), jnp.float32))   # BatchNorm1d bias
        w2s.append(jax.random.uniform(k3, (hidden_features, 2 * feat), jnp.float32, -lim2, lim2))
        b2s.append(jax.random.uniform(k4, (2 * feat,), jnp.float32, -lim2, lim2))
        pattern = i % 2
        mask = jnp.zeros((feat,), jnp.float32).at[pattern::2].set(1.0)
        masks.append(mask[None, :])
    return {
        "w1": jnp.stack(w1s), "b1": jnp.stack(b1s),
        "gamma": jnp.stack(gs), "beta": jnp.stack(bs),
        "w2": jnp.stack(w2s), "b2": jnp.stack(b2s),
        "masks": jnp.stack(masks),   # (num_flows, 1, F)
    }


def fold_params(raw):
    """Fold the 0/1 masks into the weights (exact for binary masks):
       W1' = mask (rows) * W1  ->  x @ W1' == (x * mask) @ W1
       W2' / b2' scaled by (1 - mask) on both the scale and trans output halves."""
    masks = raw["masks"]                       # (nf, 1, F)
    inv = 1.0 - masks
    col = jnp.concatenate([inv, inv], axis=-1)  # (nf, 1, 2F): scale half | trans half
    return {
        "w1": raw["w1"] * jnp.transpose(masks, (0, 2, 1)),   # (nf, F, H)
        "b1": raw["b1"],
        "gamma": raw["gamma"], "beta": raw["beta"],
        "w2": raw["w2"] * col,                                # (nf, H, 2F)
        "b2": raw["b2"] * col[:, 0, :],                       # (nf, 2F)
    }


def _reference_forward(x_use, x_disuse, raw):
    """Pure-JAX reference reproducing the original module math with raw (unfolded)
    parameters -- also validates the mask-folding transformation."""
    x = x_use.astype(jnp.float32)
    feat = x.shape[-1]
    nflows = raw["w1"].shape[0]
    for f in range(nflows):
        mask = raw["masks"][f]          # (1, F)
        inv_mask = 1.0 - mask
        x0, x1 = x * mask, x * inv_mask
        h = x0 @ raw["w1"][f] + raw["b1"][f]
        mean = jnp.mean(h, axis=0, keepdims=True)
        var = jnp.mean((h - mean) ** 2, axis=0, keepdims=True)
        h = (h - mean) / jnp.sqrt(var + BN_EPS)
        h = h * raw["gamma"][f] + raw["beta"][f]
        h = jnp.maximum(h, 0.0)
        y = h @ raw["w2"][f] + raw["b2"][f]
        scale = jnp.tanh(y[:, :feat]) * inv_mask   # torch.chunk: scale = first chunk
        trans = y[:, feat:] * inv_mask
        x = x0 + (x1 * jnp.exp(scale) + trans)
    split = feat // 2
    _xd, xu = x[:, :split], x[:, split:]
    xd = _xd if x_disuse is None else jnp.concatenate([x_disuse, _xd], axis=1)
    return xu, xd


if __name__ == "__main__":
    # MultiScaleLayer1D(in_features=16, layer_id=0, hidden_features=32,
    #                   num_nn_layers=2, num_flow_layers=3)
    in_features, layer_id = 16, 0
    hidden_features, num_flow_layers = 32, 3
    batch = 8

    key = jax.random.PRNGKey(0)
    key, kx = jax.random.split(key)
    feat = in_features // (2 ** layer_id)
    x_use = jax.random.normal(kx, (batch, feat), jnp.float32)
    x_disuse = None  # first multi-scale layer

    raw_params = init_params(key, in_features, layer_id, hidden_features, num_flow_layers)
    kparams = fold_params(raw_params)

    out_use, out_disuse = multi_scale_layer_1d_forward(x_use, x_disuse, kparams)
    out_use = jax.block_until_ready(out_use)
    out_disuse = jax.block_until_ready(out_disuse)

    ref_use, ref_disuse = _reference_forward(x_use, x_disuse, raw_params)
    assert out_use.shape == (batch, feat // 2) and out_disuse.shape == (batch, feat // 2)
    assert jnp.allclose(out_use, ref_use, rtol=1e-3, atol=1e-3)
    assert jnp.allclose(out_disuse, ref_disuse, rtol=1e-3, atol=1e-3)

    print("KERNEL_OK")
</pallas_src>

<mosaic_0001>
module attributes {stable_mosaic.version = 11 : i64} {
  func.func @_multiscale_flows_kernel(%arg0: memref<8x16xf32, #tpu.memory_space<vmem>>, %arg1: memref<3x16x32xf32, #tpu.memory_space<vmem>>, %arg2: memref<3x32xf32, #tpu.memory_space<vmem>>, %arg3: memref<3x32xf32, #tpu.memory_space<vmem>>, %arg4: memref<3x32xf32, #tpu.memory_space<vmem>>, %arg5: memref<3x32x32xf32, #tpu.memory_space<vmem>>, %arg6: memref<3x32xf32, #tpu.memory_space<vmem>>, %arg7: memref<8x16xf32, #tpu.memory_space<vmem>>) attributes {dimension_semantics = [], scalar_prefetch = 0 : i64, scratch_operands = 0 : i64, tpu.core_type = #tpu.core_type<tc>} {
    %c0 = arith.constant 0 : index
    %c0_0 = arith.constant 0 : index
    %0 = vector.load %arg0[%c0, %c0_0] : memref<8x16xf32, #tpu.memory_space<vmem>>, vector<8x16xf32>
    %c0_1 = arith.constant 0 : index
    %c0_2 = arith.constant 0 : index
    %c0_3 = arith.constant 0 : index
    %1 = vector.load %arg1[%c0_1, %c0_2, %c0_3] : memref<3x16x32xf32, #tpu.memory_space<vmem>>, vector<1x16x32xf32>
    %2 = vector.shape_cast %1 : vector<1x16x32xf32> to vector<16x32xf32>
    %cst = arith.constant dense<0.000000e+00> : vector<8x32xf32>
    %3 = tpu.matmul %0, %2, %cst {dimension_numbers = #tpu.dot_dimension_numbers<[1], [0], [0], [1], [0, 0, 1, 1], [], []>} : vector<8x16xf32>, vector<16x32xf32>, vector<8x32xf32> -> vector<8x32xf32>
    %c0_4 = arith.constant 0 : index
    %c0_5 = arith.constant 0 : index
    %4 = vector.load %arg2[%c0_4, %c0_5] : memref<3x32xf32, #tpu.memory_space<vmem>>, vector<1x32xf32>
    %5 = vector.broadcast %4 : vector<1x32xf32> to vector<8x32xf32>
    %6 = arith.addf %3, %5 : vector<8x32xf32>
    %cst_6 = arith.constant dense<0.000000e+00> : vector<32xf32>
    %7 = vector.multi_reduction <add>, %6, %cst_6 [0] : vector<8x32xf32> to vector<32xf32>
    %8 = vector.shape_cast %7 : vector<32xf32> to vector<1x32xf32>
    %cst_7 = arith.constant 1.250000e-01 : f32
    %9 = vector.broadcast %cst_7 : f32 to vector<1x32xf32>
    %10 = arith.mulf %8, %9 : vector<1x32xf32>
    %11 = arith.mulf %6, %6 : vector<8x32xf32>
    %cst_8 = arith.constant dense<0.000000e+00> : vector<32xf32>
    %12 = vector.multi_reduction <add>, %11, %cst_8 [0] : vector<8x32xf32> to vector<32xf32>
    %13 = vector.shape_cast %12 : vector<32xf32> to vector<1x32xf32>
    %cst_9 = arith.constant 1.250000e-01 : f32
    %14 = vector.broadcast %cst_9 : f32 to vector<1x32xf32>
    %15 = arith.mulf %13, %14 : vector<1x32xf32>
    %16 = arith.mulf %10, %10 : vector<1x32xf32>
    %17 = arith.subf %15, %16 : vector<1x32xf32>
    %c0_10 = arith.constant 0 : index
    %c0_11 = arith.constant 0 : index
    %18 = vector.load %arg3[%c0_10, %c0_11] : memref<3x32xf32, #tpu.memory_space<vmem>>, vector<1x32xf32>
    %cst_12 = arith.constant 9.99999974E-6 : f32
    %19 = vector.broadcast %cst_12 : f32 to vector<1x32xf32>
    %20 = arith.addf %17, %19 : vector<1x32xf32>
    %21 = math.rsqrt %20 : vector<1x32xf32>
    %22 = arith.mulf %18, %21 : vector<1x32xf32>
    %23 = vector.broadcast %22 : vector<1x32xf32> to vector<8x32xf32>
    %24 = arith.mulf %6, %23 : vector<8x32xf32>
    %c0_13 = arith.constant 0 : index
    %c0_14 = arith.constant 0 : index
    %25 = vector.load %arg4[%c0_13, %c0_14] : memref<3x32xf32, #tpu.memory_space<vmem>>, vector<1x32xf32>
    %26 = arith.mulf %10, %22 : vector<1x32xf32>
    %27 = arith.subf %25, %26 : vector<1x32xf32>
    %28 = vector.broadcast %27 : vector<1x32xf32> to vector<8x32xf32>
    %29 = arith.addf %24, %28 : vector<8x32xf32>
    %cst_15 = arith.constant 0.000000e+00 : f32
    %30 = vector.broadcast %cst_15 : f32 to vector<8x32xf32>
    %31 = arith.maximumf %29, %30 : vector<8x32xf32>
    %c0_16 = arith.constant 0 : index
    %c0_17 = arith.constant 0 : index
    %c0_18 = arith.constant 0 : index
    %32 = vector.load %arg5[%c0_16, %c0_17, %c0_18] : memref<3x32x32xf32, #tpu.memory_space<vmem>>, vector<1x32x32xf32>
    %33 = vector.shape_cast %32 : vector<1x32x32xf32> to vector<32x32xf32>
    %cst_19 = arith.constant dense<0.000000e+00> : vector<8x32xf32>
    %34 = tpu.matmul %31, %33, %cst_19 {dimension_numbers = #tpu.dot_dimension_numbers<[1], [0], [0], [1], [0, 0, 1, 1], [], []>} : vector<8x32xf32>, vector<32x32xf32>, vector<8x32xf32> -> vector<8x32xf32>
    %c0_20 = arith.constant 0 : index
    %c0_21 = arith.constant 0 : index
    %35 = vector.load %arg6[%c0_20, %c0_21] : memref<3x32xf32, #tpu.memory_space<vmem>>, vector<1x32xf32>
    %36 = vector.broadcast %35 : vector<1x32xf32> to vector<8x32xf32>
    %37 = arith.addf %34, %36 : vector<8x32xf32>
    %38 = vector.extract_strided_slice %37 {offsets = [0, 0], sizes = [8, 16], strides = [1, 1]} : vector<8x32xf32> to vector<8x16xf32>
    %39 = math.tanh %38 : vector<8x16xf32>
    %40 = vector.extract_strided_slice %37 {offsets = [0, 16], sizes = [8, 16], strides = [1, 1]} : vector<8x32xf32> to vector<8x16xf32>
    %41 = math.exp %39 : vector<8x16xf32>
    %42 = arith.mulf %0, %41 : vector<8x16xf32>
    %43 = arith.addf %42, %40 : vector<8x16xf32>
    %c1 = arith.constant 1 : index
    %c0_22 = arith.constant 0 : index
    %c0_23 = arith.constant 0 : index
    %44 = vector.load %arg1[%c1, %c0_22, %c0_23] : memref<3x16x32xf32, #tpu.memory_space<vmem>>, vector<1x16x32xf32>
    %45 = vector.shape_cast %44 : vector<1x16x32xf32> to vector<16x32xf32>
    %cst_24 = arith.constant dense<0.000000e+00> : vector<8x32xf32>
    %46 = tpu.matmul %43, %45, %cst_24 {dimension_numbers = #tpu.dot_dimension_numbers<[1], [0], [0], [1], [0, 0, 1, 1], [], []>} : vector<8x16xf32>, vector<16x32xf32>, vector<8x32xf32> -> vector<8x32xf32>
    %c1_25 = arith.constant 1 : index
    %c0_26 = arith.constant 0 : index
    %47 = vector.load %arg2[%c1_25, %c0_26] : memref<3x32xf32, #tpu.memory_space<vmem>>, vector<1x32xf32>
    %48 = vector.broadcast %47 : vector<1x32xf32> to vector<8x32xf32>
    %49 = arith.addf %46, %48 : vector<8x32xf32>
    %cst_27 = arith.constant dense<0.000000e+00> : vector<32xf32>
    %50 = vector.multi_reduction <add>, %49, %cst_27 [0] : vector<8x32xf32> to vector<32xf32>
    %51 = vector.shape_cast %50 : vector<32xf32> to vector<1x32xf32>
    %cst_28 = arith.constant 1.250000e-01 : f32
    %52 = vector.broadcast %cst_28 : f32 to vector<1x32xf32>
    %53 = arith.mulf %51, %52 : vector<1x32xf32>
    %54 = arith.mulf %49, %49 : vector<8x32xf32>
    %cst_29 = arith.constant dense<0.000000e+00> : vector<32xf32>
    %55 = vector.multi_reduction <add>, %54, %cst_29 [0] : vector<8x32xf32> to vector<32xf32>
    %56 = vector.shape_cast %55 : vector<32xf32> to vector<1x32xf32>
    %cst_30 = arith.constant 1.250000e-01 : f32
    %57 = vector.broadcast %cst_30 : f32 to vector<1x32xf32>
    %58 = arith.mulf %56, %57 : vector<1x32xf32>
    %59 = arith.mulf %53, %53 : vector<1x32xf32>
    %60 = arith.subf %58, %59 : vector<1x32xf32>
    %c1_31 = arith.constant 1 : index
    %c0_32 = arith.constant 0 : index
    %61 = vector.load %arg3[%c1_31, %c0_32] : memref<3x32xf32, #tpu.memory_space<vmem>>, vector<1x32xf32>
    %cst_33 = arith.constant 9.99999974E-6 : f32
    %62 = vector.broadcast %cst_33 : f32 to vector<1x32xf32>
    %63 = arith.addf %60, %62 : vector<1x32xf32>
    %64 = math.rsqrt %63 : vector<1x32xf32>
    %65 = arith.mulf %61, %64 : vector<1x32xf32>
    %66 = vector.broadcast %65 : vector<1x32xf32> to vector<8x32xf32>
    %67 = arith.mulf %49, %66 : vector<8x32xf32>
    %c1_34 = arith.constant 1 : index
    %c0_35 = arith.constant 0 : index
    %68 = vector.load %arg4[%c1_34, %c0_35] : memref<3x32xf32, #tpu.memory_space<vmem>>, vector<1x32xf32>
    %69 = arith.mulf %53, %65 : vector<1x32xf32>
    %70 = arith.subf %68, %69 : vector<1x32xf32>
    %71 = vector.broadcast %70 : vector<1x32xf32> to vector<8x32xf32>
    %72 = arith.addf %67, %71 : vector<8x32xf32>
    %cst_36 = arith.constant 0.000000e+00 : f32
    %73 = vector.broadcast %cst_36 : f32 to vector<8x32xf32>
    %74 = arith.maximumf %72, %73 : vector<8x32xf32>
    %c1_37 = arith.constant 1 : index
    %c0_38 = arith.constant 0 : index
    %c0_39 = arith.constant 0 : index
    %75 = vector.load %arg5[%c1_37, %c0_38, %c0_39] : memref<3x32x32xf32, #tpu.memory_space<vmem>>, vector<1x32x32xf32>
    %76 = vector.shape_cast %75 : vector<1x32x32xf32> to vector<32x32xf32>
    %cst_40 = arith.constant dense<0.000000e+00> : vector<8x32xf32>
    %77 = tpu.matmul %74, %76, %cst_40 {dimension_numbers = #tpu.dot_dimension_numbers<[1], [0], [0], [1], [0, 0, 1, 1], [], []>} : vector<8x32xf32>, vector<32x32xf32>, vector<8x32xf32> -> vector<8x32xf32>
    %c1_41 = arith.constant 1 : index
    %c0_42 = arith.constant 0 : index
    %78 = vector.load %arg6[%c1_41, %c0_42] : memref<3x32xf32, #tpu.memory_space<vmem>>, vector<1x32xf32>
    %79 = vector.broadcast %78 : vector<1x32xf32> to vector<8x32xf32>
    %80 = arith.addf %77, %79 : vector<8x32xf32>
    %81 = vector.extract_strided_slice %80 {offsets = [0, 0], sizes = [8, 16], strides = [1, 1]} : vector<8x32xf32> to vector<8x16xf32>
    %82 = math.tanh %81 : vector<8x16xf32>
    %83 = vector.extract_strided_slice %80 {offsets = [0, 16], sizes = [8, 16], strides = [1, 1]} : vector<8x32xf32> to vector<8x16xf32>
    %84 = math.exp %82 : vector<8x16xf32>
    %85 = arith.mulf %43, %84 : vector<8x16xf32>
    %86 = arith.addf %85, %83 : vector<8x16xf32>
    %c2 = arith.constant 2 : index
    %c0_43 = arith.constant 0 : index
    %c0_44 = arith.constant 0 : index
    %87 = vector.load %arg1[%c2, %c0_43, %c0_44] : memref<3x16x32xf32, #tpu.memory_space<vmem>>, vector<1x16x32xf32>
    %88 = vector.shape_cast %87 : vector<1x16x32xf32> to vector<16x32xf32>
    %cst_45 = arith.constant dense<0.000000e+00> : vector<8x32xf32>
    %89 = tpu.matmul %86, %88, %cst_45 {dimension_numbers = #tpu.dot_dimension_numbers<[1], [0], [0], [1], [0, 0, 1, 1], [], []>} : vector<8x16xf32>, vector<16x32xf32>, vector<8x32xf32> -> vector<8x32xf32>
    %c2_46 = arith.constant 2 : index
    %c0_47 = arith.constant 0 : index
    %90 = vector.load %arg2[%c2_46, %c0_47] : memref<3x32xf32, #tpu.memory_space<vmem>>, vector<1x32xf32>
    %91 = vector.broadcast %90 : vector<1x32xf32> to vector<8x32xf32>
    %92 = arith.addf %89, %91 : vector<8x32xf32>
    %cst_48 = arith.constant dense<0.000000e+00> : vector<32xf32>
    %93 = vector.multi_reduction <add>, %92, %cst_48 [0] : vector<8x32xf32> to vector<32xf32>
    %94 = vector.shape_cast %93 : vector<32xf32> to vector<1x32xf32>
    %cst_49 = arith.constant 1.250000e-01 : f32
    %95 = vector.broadcast %cst_49 : f32 to vector<1x32xf32>
    %96 = arith.mulf %94, %95 : vector<1x32xf32>
    %97 = arith.mulf %92, %92 : vector<8x32xf32>
    %cst_50 = arith.constant dense<0.000000e+00> : vector<32xf32>
    %98 = vector.multi_reduction <add>, %97, %cst_50 [0] : vector<8x32xf32> to vector<32xf32>
    %99 = vector.shape_cast %98 : vector<32xf32> to vector<1x32xf32>
    %cst_51 = arith.constant 1.250000e-01 : f32
    %100 = vector.broadcast %cst_51 : f32 to vector<1x32xf32>
    %101 = arith.mulf %99, %100 : vector<1x32xf32>
    %102 = arith.mulf %96, %96 : vector<1x32xf32>
    %103 = arith.subf %101, %102 : vector<1x32xf32>
    %c2_52 = arith.constant 2 : index
    %c0_53 = arith.constant 0 : index
    %104 = vector.load %arg3[%c2_52, %c0_53] : memref<3x32xf32, #tpu.memory_space<vmem>>, vector<1x32xf32>
    %cst_54 = arith.constant 9.99999974E-6 : f32
    %105 = vector.broadcast %cst_54 : f32 to vector<1x32xf32>
    %106 = arith.addf %103, %105 : vector<1x32xf32>
    %107 = math.rsqrt %106 : vector<1x32xf32>
    %108 = arith.mulf %104, %107 : vector<1x32xf32>
    %109 = vector.broadcast %108 : vector<1x32xf32> to vector<8x32xf32>
    %110 = arith.mulf %92, %109 : vector<8x32xf32>
    %c2_55 = arith.constant 2 : index
    %c0_56 = arith.constant 0 : index
    %111 = vector.load %arg4[%c2_55, %c0_56] : memref<3x32xf32, #tpu.memory_space<vmem>>, vector<1x32xf32>
    %112 = arith.mulf %96, %108 : vector<1x32xf32>
    %113 = arith.subf %111, %112 : vector<1x32xf32>
    %114 = vector.broadcast %113 : vector<1x32xf32> to vector<8x32xf32>
    %115 = arith.addf %110, %114 : vector<8x32xf32>
    %cst_57 = arith.constant 0.000000e+00 : f32
    %116 = vector.broadcast %cst_57 : f32 to vector<8x32xf32>
    %117 = arith.maximumf %115, %116 : vector<8x32xf32>
    %c2_58 = arith.constant 2 : index
    %c0_59 = arith.constant 0 : index
    %c0_60 = arith.constant 0 : index
    %118 = vector.load %arg5[%c2_58, %c0_59, %c0_60] : memref<3x32x32xf32, #tpu.memory_space<vmem>>, vector<1x32x32xf32>
    %119 = vector.shape_cast %118 : vector<1x32x32xf32> to vector<32x32xf32>
    %cst_61 = arith.constant dense<0.000000e+00> : vector<8x32xf32>
    %120 = tpu.matmul %117, %119, %cst_61 {dimension_numbers = #tpu.dot_dimension_numbers<[1], [0], [0], [1], [0, 0, 1, 1], [], []>} : vector<8x32xf32>, vector<32x32xf32>, vector<8x32xf32> -> vector<8x32xf32>
    %c2_62 = arith.constant 2 : index
    %c0_63 = arith.constant 0 : index
    %121 = vector.load %arg6[%c2_62, %c0_63] : memref<3x32xf32, #tpu.memory_space<vmem>>, vector<1x32xf32>
    %122 = vector.broadcast %121 : vector<1x32xf32> to vector<8x32xf32>
    %123 = arith.addf %120, %122 : vector<8x32xf32>
    %124 = vector.extract_strided_slice %123 {offsets = [0, 0], sizes = [8, 16], strides = [1, 1]} : vector<8x32xf32> to vector<8x16xf32>
    %125 = math.tanh %124 : vector<8x16xf32>
    %126 = vector.extract_strided_slice %123 {offsets = [0, 16], sizes = [8, 16], strides = [1, 1]} : vector<8x32xf32> to vector<8x16xf32>
    %127 = math.exp %125 : vector<8x16xf32>
    %128 = arith.mulf %86, %127 : vector<8x16xf32>
    %129 = arith.addf %128, %126 : vector<8x16xf32>
    %c0_64 = arith.constant 0 : index
    %c0_65 = arith.constant 0 : index
    %130 = vector.load %arg7[%c0_64, %c0_65] : memref<8x16xf32, #tpu.memory_space<vmem>>, vector<8x16xf32>
    tpu.vector_store %arg7[%c0_64, %c0_65], %129 {strides = array<i32>} : memref<8x16xf32, #tpu.memory_space<vmem>>, vector<8x16xf32>,
    return
  }
}

</mosaic_0001>

<bundles_post_ra>
// kernel: tpu_custom_call.1
= control target key start
LH: loop header
LB: loop body
LE: loop exit
PB: predicated region body
PF: predicated region fallthrough
CT: control target
= control target key end

     0   :  { %12 = vsyncpa [#allocation3], 0  ;;  %s1146_s0 = inlined_call_operand.hbm [shape: f32[8,16], index: 0, kind: input, shape index: {}]   ;;  %s1147_s1 = inlined_call_operand.hbm [shape: f32[3,16,32], index: 1, kind: input, shape index: {}]   ;;  %s1148_s2 = inlined_call_operand.vmem [shape: f32[3,32], index: 2, kind: input, shape index: {}]   ;;  %s1149_s3 = inlined_call_operand.vmem [shape: f32[3,32], index: 3, kind: input, shape index: {}]   ;;  %s1150_s4 = inlined_call_operand.vmem [shape: f32[3,32], index: 4, kind: input, shape index: {}]   ;;  %s1151_s5 = inlined_call_operand.hbm [shape: f32[3,32,32], index: 5, kind: input, shape index: {}]   ;;  %s1152_s6 = inlined_call_operand.vmem [shape: f32[3,32], index: 6, kind: input, shape index: {}]   ;;  %s1153_s7 = inlined_call_operand.hbm [shape: f32[8,16], index: 7, kind: output, shape index: {}]  }
   0x1   :  { %13 = vsyncpa [#allocation6], 0 }
   0x2   :  { %14 = vsyncpa [#allocation4], 0  ;;  %s953_s24 = smov [#allocation5]   ;;  %s859_s28 = scalar_lea.hbm %s1147_s1, 768 }
   0x3   :  { %s30_s25 = sshll.u32 %s953_s24, 4  ;;  %p860_p0 = scmp.ne.s32.totalorder %s1147_s1, %s859_s28  ;;  %s31_s25 = int_to_ptr.vmem [resolvable:$true] %s30_s25 }
   0x4   :  { %p863_p1 = scmp.lt.u32.totalorder %s859_s28, %s1147_s1 }
   0x6   :  { %p865_p2 = pnand %p863_p1, %p860_p0 }
   0x8   :  { %868 = shalt.err (!%p865_p2)
}
   0x9   :  { %s869_s10 = scalar_lea.vmem %s31_s25, 768  ;;  %p874_p4 = scmp.lt.s32.totalorder %s31_s25, %s31_s25 }
   0xa   :  { %p870_p3 = scmp.ne.s32.totalorder %s31_s25, %s869_s10  ;;  %p875_p5 = scmp.lt.s32.totalorder %s869_s10, %s869_s10 }
   0xc   :  { %p876_p6 = por %p875_p5, %p874_p4 }
   0xe   :  { %p877_p7 = pnand %p876_p6, %p870_p3 }
  0x10   :  { %880 = shalt.err (!%p877_p7)
}
  0x11   :  { %s954_s11 = smov 128   ;;  %s955_s12 = smov 8  }
  0x12   :  { %36 = dma.hbm_to_vmem [thread:$0]  %s1147_s1, 768, %s31_s25, [#allocation6], %s954_s11, %s954_s11, %s955_s12  }
  0x13   :  { %s956_s15 = smov [#allocation2]   ;;  %s957_s17 = smov [#allocation7]  }
  0x14   :  { %s21_s16 = sshll.u32 %s956_s15, 4  ;;  %s48_s18 = sshll.u32 %s957_s17, 4  ;;  %s22_s16 = int_to_ptr.vmem [resolvable:$true] %s21_s16  ;;  %s49_s18 = int_to_ptr.vmem [resolvable:$true] %s48_s18 }
  0x15   :  { %s881_s21 = scalar_lea.hbm %s1146_s0, 128 }
  0x16   :  { %p882_p8 = scmp.ne.s32.totalorder %s1146_s0, %s881_s21  ;;  %p885_p9 = scmp.lt.u32.totalorder %s881_s21, %s1146_s0 }
  0x18   :  { %p887_p10 = pnand %p885_p9, %p882_p8 }
  0x1a   :  { %890 = shalt.err (!%p887_p10)
}
  0x1b   :  { %s891_s1 = scalar_lea.vmem %s22_s16, 128  ;;  %p896_p12 = scmp.lt.s32.totalorder %s22_s16, %s22_s16 }
  0x1c   :  { %p892_p11 = scmp.ne.s32.totalorder %s22_s16, %s891_s1  ;;  %p897_p13 = scmp.lt.s32.totalorder %s891_s1, %s891_s1 }
  0x1e   :  { %p898_p0 = por %p897_p13, %p896_p12 }
  0x20   :  { %p899_p1 = pnand %p898_p0, %p892_p11 }
  0x22   :  { %902 = shalt.err (!%p899_p1)
}
  0x23   :  { %24 = dma.hbm_to_vmem [thread:$0]  %s1146_s0, 128, %s22_s16, [#allocation3]  }
  0x24   :  { %s903_s30 = scalar_lea.hbm %s1151_s5, 1536 }
  0x25   :  { %p904_p2 = scmp.ne.s32.totalorder %s1151_s5, %s903_s30  ;;  %p907_p3 = scmp.lt.u32.totalorder %s903_s30, %s1151_s5 }
  0x27   :  { %p909_p4 = pnand %p907_p3, %p904_p2 }
  0x29   :  { %912 = shalt.err (!%p909_p4)
}
  0x2a   :  { %s913_s14 = scalar_lea.vmem %s49_s18, 1536  ;;  %p918_p6 = scmp.lt.s32.totalorder %s49_s18, %s49_s18 }
  0x2b   :  { %p914_p5 = scmp.ne.s32.totalorder %s49_s18, %s913_s14  ;;  %p919_p7 = scmp.lt.s32.totalorder %s913_s14, %s913_s14 }
  0x2d   :  { %p920_p8 = por %p919_p7, %p918_p6 }
  0x2f   :  { %p921_p9 = pnand %p920_p8, %p914_p5 }
  0x31   :  { %924 = shalt.err (!%p921_p9)
}
  0x32   :  { %54 = dma.hbm_to_vmem [thread:$0]  %s1151_s5, 1536, %s49_s18, [#allocation6], %s954_s11, %s954_s11, %s955_s12  }
  0x33   :  { %947 = dma.done.wait [#allocation3], 128  }
  0x34   :  { %948 = vsyncadd [#allocation3], 4294967168 }
  0x35   :  { %949 = dma.done.wait [#allocation6], 2304  }
  0x36   :  { %950 = vsyncadd [#allocation6], 4294964992  ;;  %v958_v0 = vmov 0.0|0.0   ;;  %vm959_vm0 = vmmov 0   ;;  %v960_v1 = vmov 0.0   ;;  %v67_v2 = vld [vmem:[#allocation5] sm:$0xff]  ;;  %v172_v36 = vlaneseq }
  0x37   :  { %804 = vmatprep.subr.bf16.mxu0 %v958_v0  ;;  %754 = vmatprep.mubr.msk.f32.mxu0 %vm959_vm0, %v960_v1  ;;  %v68_v3 = vld [vmem:[#allocation5 + $0x8] sm:$0xff]  ;;  %v1051_v5 = vld [vmem:[#allocation2] sm:$0xff]  ;;  %vm74_vm1 = vcmask 130048   ;;  %v186_v6 = vld [vmem:[#allocation7] sm:$0xff]  ;;  %vm148_vm2 = vcmask 261120   ;;  %s961_s21 = smov 112  }
  0x38   :  { %807 = vmatprep.subr.bf16.mxu1 %v958_v0  ;;  %765 = vmatprep.mubr.msk.f32.mxu1 %vm959_vm0, %v960_v1  ;;  %v805_v4 = vpack.c.bf16 %v68_v3, %v67_v2  ;;  %v187_v7 = vld [vmem:[#allocation7 + $0x8] sm:$0xff]  ;;  %v188_v9 = vld [vmem:[#allocation7 + $0x10] sm:$0xff]  ;;  %v189_v10 = vld [vmem:[#allocation7 + $0x18] sm:$0xff]  ;;  %v173_v37 = vshrl.u32 %v172_v36, 7 }
  0x39   :  { %v808_v8 = vpack.c.bf16 %v187_v7, %v186_v6  ;;  %v811_v11 = vpack.c.bf16 %v189_v10, %v188_v9  ;;  %v714_v12 = vld [vmem:[%s1148_s2] ss:$0 sm:$0xff]  ;;  %v278_v50 = vld [vmem:[#allocation5 + $0x10] sm:$0xff]  ;;  %v399_v6 = vld [vmem:[#allocation7 + $0x38] sm:$0xff] }
  0x3a   :  { %806 = vmatpush3.bf16.msra.mxu0 %v805_v4  ;;  %v168_v38 = vld [vmem:[%s1149_s3] sm:$0x1]  ;;  %v1068_v39 = vsub.s32 0, %v173_v37  ;;  %v396_v63 = vld [vmem:[#allocation7 + $0x20] sm:$0xff]  ;;  %v398_v4 = vld [vmem:[#allocation7 + $0x30] sm:$0xff] }
  0x3b   :  { %813 = vmatprep.subr.bf16.mxu0 %v958_v0  ;;  %809 = vmatpush3.bf16.msra.mxu1 %v808_v8  ;;  %v177_v42 = vld [vmem:[%s1150_s4] sm:$0x1]  ;;  %v820_v7 = vpack.c.bf16 %v399_v6, %v398_v4 }
  0x3c   :  { %810 = vmatprep.subr.bf16.mxu1 %v958_v0  ;;  %v279_v51 = vld [vmem:[#allocation5 + $0x18] sm:$0xff] }
  0x3d   :  { %755 = vmatmul.mubr.msk.f32.vlgmr.msra.gmra.mrb[0].mxu0 %vm74_vm1, %v1051_v5  ;;  %v814_v52 = vpack.c.bf16 %v279_v51, %v278_v50  ;;  %v716_v53 = vld [vmem:[%s1152_s6] ss:$0 sm:$0xff] }
  0x3e   :  { %772 = vmatprep.mubr.msk.f32.mxu0 %vm959_vm0, %v960_v1  ;;  %v397_v2 = vld [vmem:[#allocation7 + $0x28] sm:$0xff] }
  0x3f   :  { %812 = vmatpush3.bf16.msra.mxu1 %v811_v11  ;;  %815 = vmatpush3.bf16.msra.mxu0 %v814_v52  ;;  %v817_v3 = vpack.c.bf16 %v397_v2, %v396_v63 }
  0x40   :  { %822 = vmatprep.subr.bf16.mxu1 %v958_v0  ;;  %816 = vmatprep.subr.bf16.mxu0 %v958_v0 }
 0x110   :  { %v144_v13 = vpop.f32.mrb[0].mxu0 }
 0x111   :  { %v145_v14 = vadd.f32 %v714_v12, %v144_v13  ;;  %v756_v15 = vpop.f32.mrb[1].mxu0 }
 0x113   :  { %v149_v16 = vsel %vm148_vm2, %v145_v14, 0.0  ;;  %v157_v17 = vmul.f32 %v145_v14, %v145_v14 }
 0x114   :  { %v150_v18 = vrot.slane %v149_v16, 4 }
 0x115   :  { %v158_v19 = vsel %vm148_vm2, %v157_v17, 0.0 }
 0x116   :  { %v151_v20 = vadd.f32 %v150_v18, %v149_v16  ;;  %v159_v21 = vrot.slane %v158_v19, 4 }
 0x118   :  { %v152_v22 = vrot.slane %v151_v20, 2  ;;  %v160_v23 = vadd.f32 %v159_v21, %v158_v19 }
 0x11a   :  { %v153_v24 = vadd.f32 %v152_v22, %v151_v20  ;;  %v161_v25 = vrot.slane %v160_v23, 2 }
 0x11c   :  { %v154_v26 = vrot.slane %v153_v24, 1  ;;  %v162_v27 = vadd.f32 %v161_v25, %v160_v23 }
 0x11e   :  { %v155_v28 = vadd.f32 %v154_v26, %v153_v24  ;;  %v163_v29 = vrot.slane %v162_v27, 1 }
 0x120   :  { %v156_v30 = vmul.f32 0.125, %v155_v28  ;;  %v164_v31 = vadd.f32 %v163_v29, %v162_v27 }
 0x122   :  { %v165_v32 = vmul.f32 0.125, %v164_v31  ;;  %v166_v33 = vmul.f32 %v156_v30, %v156_v30  ;;  %v377_v31 = vld [vmem:[%s1149_s3 + $0x1] sm:$0x1] }
 0x124   :  { %v167_v34 = vsub.f32 %v165_v32, %v166_v33 }
 0x126   :  { %v169_v35 = vadd.f32 1e-05, %v167_v34  ;;  %v386_v34 = vld [vmem:[%s1150_s4 + $0x1] sm:$0x1] }
 0x128   :  { %841 = vrsqrt.f32 %v169_v35 }
 0x132   :  { %v842_v40 = vpop.eup %841 }
 0x133   :  { %v171_v41 = vmul.f32 %v842_v40, %v168_v38 }
 0x135   :  { %v175_v43 = vrot.slane %v171_v41, %v1068_v39  ;;  %v178_v44 = vmul.f32 %v171_v41, %v156_v30 }
 0x137   :  { %v179_v45 = vsub.f32 %v177_v42, %v178_v44  ;;  %v176_v46 = vmul.f32 %v175_v43, %v145_v14  ;;  %v488_v43 = vld [vmem:[#allocation5 + $0x20] sm:$0xff]  ;;  %v489_v44 = vld [vmem:[#allocation5 + $0x28] sm:$0xff] }
 0x139   :  { %v183_v47 = vrot.slane %v179_v45, %v1068_v39  ;;  %v823_v45 = vpack.c.bf16 %v489_v44, %v488_v43 }
 0x13b   :  { %v184_v48 = vadd.f32 %v183_v47, %v176_v46  ;;  %v720_v46 = vld [vmem:[%s1152_s6 + $0x1] ss:$0 sm:$0xff] }
 0x13d   :  { %v185_v49 = vmax.f32 %v184_v48, 0.0 }
 0x13f   :  { %766 = vmatmul.mubr.msk.f32.vlgmr.msra.gmra.mrb[0].mxu1 %vm148_vm2, %v185_v49 }
 0x140   :  { %790 = vmatprep.mubr.msk.f32.mxu1 %vm959_vm0, %v960_v1  ;;  %824 = vmatpush3.bf16.msra.mxu1 %v823_v45 }
 0x141   :  { %825 = vmatprep.subr.bf16.mxu1 %v958_v0 }
 0x212   :  { %v264_v54 = vpop.f32.mrb[0].mxu1 }
 0x213   :  { %v265_v55 = vadd.f32 %v716_v53, %v264_v54  ;;  %v767_v56 = vpop.f32.mrb[1].mxu1 }
 0x214   :  { %v606_v56 = vld [vmem:[#allocation7 + $0x40] sm:$0xff] }
 0x215   :  { %273 = vrot.lane.b32.xlu0 %v265_v55, %s961_s21  ;;  %843 = vtanh.f32 %v265_v55 }
 0x21f   :  { %v844_v57 = vpop.eup %843 }
 0x220   :  { %v269_v58 = vmul.f32 1.442695, %v844_v57  ;;  %v607_v57 = vld [vmem:[#allocation7 + $0x48] sm:$0xff] }
 0x222   :  { %845 = vpow2.f32 %v269_v58  ;;  %v826_v58 = vpack.c.bf16 %v607_v57, %v606_v56 }
 0x22c   :  { %v846_v59 = vpop.eup %845 }
 0x22d   :  { %v271_v60 = vmul.f32 %v846_v59, %v1051_v5  ;;  %v718_v5 = vld [vmem:[%s1148_s2 + $0x1] ss:$0 sm:$0xff]  ;;  %v608_v59 = vld [vmem:[#allocation7 + $0x50] sm:$0xff] }
 0x287   :  { %v274_v61 = vpop.permute.xlu0 %273 }
 0x288   :  { %v1084_v62 = vadd.f32 %v274_v61, %v271_v60  ;;  %v609_v60 = vld [vmem:[#allocation7 + $0x58] sm:$0xff] }
 0x289   :  { %v829_v61 = vpack.c.bf16 %v609_v60, %v608_v59 }
 0x28a   :  { %773 = vmatmul.mubr.msk.f32.vlgmr.msra.gmra.mrb[2].mxu0 %vm74_vm1, %v1084_v62 }
 0x28b   :  { %783 = vmatprep.mubr.msk.f32.mxu0 %vm959_vm0, %v960_v1  ;;  %818 = vmatpush3.bf16.msra.mxu0 %v817_v3 }
 0x28c   :  { %819 = vmatprep.subr.bf16.mxu0 %v958_v0 }
 0x28f   :  { %821 = vmatpush3.bf16.msra.mxu0 %v820_v7 }
 0x35d   :  { %v354_v8 = vpop.f32.mrb[2].mxu0 }
 0x35e   :  { %v355_v9 = vadd.f32 %v718_v5, %v354_v8  ;;  %v774_v10 = vpop.f32.mrb[3].mxu0 }
 0x360   :  { %v358_v11 = vsel %vm148_vm2, %v355_v9, 0.0  ;;  %v366_v12 = vmul.f32 %v355_v9, %v355_v9 }
 0x361   :  { %v359_v13 = vrot.slane %v358_v11, 4 }
 0x362   :  { %v367_v14 = vsel %vm148_vm2, %v366_v12, 0.0 }
 0x363   :  { %v360_v15 = vadd.f32 %v359_v13, %v358_v11  ;;  %v368_v16 = vrot.slane %v367_v14, 4 }
 0x365   :  { %v361_v17 = vrot.slane %v360_v15, 2  ;;  %v369_v18 = vadd.f32 %v368_v16, %v367_v14 }
 0x367   :  { %v362_v19 = vadd.f32 %v361_v17, %v360_v15  ;;  %v370_v20 = vrot.slane %v369_v18, 2 }
 0x369   :  { %v363_v21 = vrot.slane %v362_v19, 1  ;;  %v371_v22 = vadd.f32 %v370_v20, %v369_v18 }
 0x36b   :  { %v364_v23 = vadd.f32 %v363_v21, %v362_v19  ;;  %v372_v24 = vrot.slane %v371_v22, 1 }
 0x36d   :  { %v365_v25 = vmul.f32 0.125, %v364_v23  ;;  %v373_v26 = vadd.f32 %v372_v24, %v371_v22  ;;  %v587_v22 = vld [vmem:[%s1149_s3 + $0x2] sm:$0x1]  ;;  %s962_s3 = smov [#allocation8]  }
 0x36f   :  { %v374_v27 = vmul.f32 0.125, %v373_v26  ;;  %v375_v28 = vmul.f32 %v365_v25, %v365_v25 }
 0x371   :  { %v376_v29 = vsub.f32 %v374_v27, %v375_v28 }
 0x373   :  { %v378_v30 = vadd.f32 1e-05, %v376_v29 }
 0x375   :  { %847 = vrsqrt.f32 %v378_v30 }
 0x37f   :  { %v848_v32 = vpop.eup %847 }
 0x380   :  { %v380_v33 = vmul.f32 %v848_v32, %v377_v31 }
 0x382   :  { %v384_v35 = vrot.slane %v380_v33, %v1068_v39  ;;  %v387_v36 = vmul.f32 %v380_v33, %v365_v25  ;;  %v596_v25 = vld [vmem:[%s1150_s4 + $0x2] sm:$0x1]  ;;  %s704_s4 = sshll.u32 %s962_s3, 4  ;;  %s705_s4 = int_to_ptr.vmem [resolvable:$true] %s704_s4 }
 0x383   :  { %v724_v33 = vld [vmem:[%s1152_s6 + $0x2] ss:$0 sm:$0xff]  ;;  %s925_s0 = scalar_lea.vmem %s705_s4, 128  ;;  %p930_p11 = scmp.lt.s32.totalorder %s705_s4, %s705_s4 }
 0x384   :  { %v388_v37 = vsub.f32 %v386_v34, %v387_v36  ;;  %v385_v38 = vmul.f32 %v384_v35, %v355_v9  ;;  %p926_p10 = scmp.ne.s32.totalorder %s705_s4, %s925_s0  ;;  %p931_p12 = scmp.lt.s32.totalorder %s925_s0, %s925_s0 }
 0x386   :  { %v392_v40 = vrot.slane %v388_v37, %v1068_v39  ;;  %p932_p13 = por %p931_p12, %p930_p11 }
 0x388   :  { %v393_v41 = vadd.f32 %v392_v40, %v385_v38  ;;  %p933_p0 = pnand %p932_p13, %p926_p10 }
 0x38a   :  { %v394_v42 = vmax.f32 %v393_v41, 0.0 }
 0x38c   :  { %784 = vmatmul.mubr.msk.f32.vlgmr.msra.gmra.mrb[4].mxu0 %vm148_vm2, %v394_v42 }
 0x45f   :  { %v474_v47 = vpop.f32.mrb[4].mxu0 }
 0x460   :  { %v475_v48 = vadd.f32 %v720_v46, %v474_v47  ;;  %v785_v49 = vpop.f32.mrb[5].mxu0 }
 0x462   :  { %483 = vrot.lane.b32.xlu0 %v475_v48, %s961_s21  ;;  %849 = vtanh.f32 %v475_v48 }
 0x46c   :  { %v850_v50 = vpop.eup %849 }
 0x46d   :  { %v479_v51 = vmul.f32 1.442695, %v850_v50 }
 0x46f   :  { %851 = vpow2.f32 %v479_v51 }
 0x479   :  { %v852_v52 = vpop.eup %851 }
 0x47a   :  { %v481_v53 = vmul.f32 %v852_v52, %v1084_v62  ;;  %v722_v62 = vld [vmem:[%s1148_s2 + $0x2] ss:$0 sm:$0xff] }
 0x4d4   :  { %v484_v54 = vpop.permute.xlu0 %483 }
 0x4d5   :  { %v486_v55 = vadd.f32 %v484_v54, %v481_v53 }
 0x4d7   :  { %791 = vmatmul.mubr.msk.f32.vlgmr.msra.gmra.mrb[2].mxu1 %vm74_vm1, %v486_v55 }
 0x4d8   :  { %801 = vmatprep.mubr.msk.f32.mxu1 %vm959_vm0, %v960_v1  ;;  %827 = vmatpush3.bf16.msra.mxu1 %v826_v58 }
 0x4d9   :  { %828 = vmatprep.subr.bf16.mxu1 %v958_v0 }
 0x4dc   :  { %830 = vmatpush3.bf16.msra.mxu1 %v829_v61 }
 0x5aa   :  { %v564_v63 = vpop.f32.mrb[2].mxu1 }
 0x5ab   :  { %v565_v2 = vadd.f32 %v722_v62, %v564_v63  ;;  %v792_v3 = vpop.f32.mrb[3].mxu1 }
 0x5ad   :  { %v568_v4 = vsel %vm148_vm2, %v565_v2, 0.0  ;;  %v576_v1 = vmul.f32 %v565_v2, %v565_v2 }
 0x5ae   :  { %v569_v6 = vrot.slane %v568_v4, 4 }
 0x5af   :  { %v577_v7 = vsel %vm148_vm2, %v576_v1, 0.0 }
 0x5b0   :  { %v570_v5 = vadd.f32 %v569_v6, %v568_v4  ;;  %v578_v8 = vrot.slane %v577_v7, 4 }
 0x5b2   :  { %v571_v0 = vrot.slane %v570_v5, 2  ;;  %v579_v9 = vadd.f32 %v578_v8, %v577_v7 }
 0x5b4   :  { %v572_v10 = vadd.f32 %v571_v0, %v570_v5  ;;  %v580_v11 = vrot.slane %v579_v9, 2 }
 0x5b6   :  { %v573_v12 = vrot.slane %v572_v10, 1  ;;  %v581_v13 = vadd.f32 %v580_v11, %v579_v9 }
 0x5b8   :  { %v574_v14 = vadd.f32 %v573_v12, %v572_v10  ;;  %v582_v15 = vrot.slane %v581_v13, 1 }
 0x5ba   :  { %v575_v16 = vmul.f32 0.125, %v574_v14  ;;  %v583_v17 = vadd.f32 %v582_v15, %v581_v13 }
 0x5bc   :  { %v584_v18 = vmul.f32 0.125, %v583_v17  ;;  %v585_v19 = vmul.f32 %v575_v16, %v575_v16 }
 0x5be   :  { %v586_v20 = vsub.f32 %v584_v18, %v585_v19 }
 0x5c0   :  { %v588_v21 = vadd.f32 1e-05, %v586_v20 }
 0x5c2   :  { %853 = vrsqrt.f32 %v588_v21 }
 0x5cc   :  { %v854_v23 = vpop.eup %853 }
 0x5cd   :  { %v590_v24 = vmul.f32 %v854_v23, %v587_v22 }
 0x5cf   :  { %v594_v26 = vrot.slane %v590_v24, %v1068_v39  ;;  %v597_v27 = vmul.f32 %v590_v24, %v575_v16 }
 0x5d1   :  { %v598_v28 = vsub.f32 %v596_v25, %v597_v27  ;;  %v595_v29 = vmul.f32 %v594_v26, %v565_v2 }
 0x5d3   :  { %v602_v30 = vrot.slane %v598_v28, %v1068_v39 }
 0x5d5   :  { %v603_v31 = vadd.f32 %v602_v30, %v595_v29 }
 0x5d7   :  { %v604_v32 = vmax.f32 %v603_v31, 0.0 }
 0x5d9   :  { %802 = vmatmul.mubr.msk.f32.vlgmr.msra.gmra.mrb[4].mxu1 %vm148_vm2, %v604_v32 }
 0x6ac   :  { %v684_v34 = vpop.f32.mrb[4].mxu1 }
 0x6ad   :  { %v685_v35 = vadd.f32 %v724_v33, %v684_v34  ;;  %v803_v36 = vpop.f32.mrb[5].mxu1 }
 0x6af   :  { %693 = vrot.lane.b32.xlu1 %v685_v35, %s961_s21  ;;  %855 = vtanh.f32 %v685_v35 }
 0x6b9   :  { %v856_v37 = vpop.eup %855 }
 0x6ba   :  { %v689_v38 = vmul.f32 1.442695, %v856_v37 }
 0x6bc   :  { %857 = vpow2.f32 %v689_v38 }
 0x6c6   :  { %v858_v40 = vpop.eup %857 }
 0x6c7   :  { %v691_v39 = vmul.f32 %v858_v40, %v486_v55 }
 0x721   :  { %v694_v41 = vpop.permute.xlu1 %693 }
 0x722   :  { %v696_v42 = vadd.f32 %v694_v41, %v691_v39 }
 0x724   :  { %697 = vst.msk [vmem:[#allocation8] sm:$0xff] %vm74_vm1, %v696_v42 }
 0x725   :  { %936 = shalt.err (!%p933_p0)
}
 0x726   :  { %s937_s5 = scalar_lea.hbm %s1153_s7, 128 }
 0x727   :  { %p938_p1 = scmp.ne.s32.totalorder %s1153_s7, %s937_s5  ;;  %p941_p2 = scmp.lt.u32.totalorder %s937_s5, %s1153_s7 }
 0x729   :  { %p943_p3 = pnand %p941_p2, %p938_p1 }
 0x72b   :  { %946 = shalt.err (!%p943_p3)
}
 0x72c   :  { %707 = dma.vmem_to_hbm [thread:$0]  %s705_s4, 128, %s1153_s7, [#allocation4]  }
 0x72d   :  { %951 = dma.done.wait [#allocation4], 128  }
 0x72e   :  { %952 = vsyncadd [#allocation4], 4294967168 }
 0x72f   :  { %711 = vsyncpa [#allocation3], 1 }
 0x730   :  { %712 = vsyncpa [#allocation6], 1 }
 0x731   :  { %713 = vsyncpa [#allocation4], 1 }

</bundles_post_ra>
